<compile_context>
chip_gen: v7x
topology: tpu7x:2x2x1
jax: 0.10.0
libtpu: 0.0.40
codegen_flags: <defaults>
</compile_context>

<pallas_src>
import functools

import jax
import jax.numpy as jnp
from jax.experimental import pallas as pl
from jax.experimental.pallas import tpu as pltpu

BN_EPS = 1e-5
LANES = 128


def _round_up(x, m):
    return ((x + m - 1) // m) * m


def _make_layout(input_size, h0, h1):
    """Row layout of the single packed (n_rows, 128) parameter buffer."""
    assert h0 + 1 <= LANES and h1 <= LANES, "hidden sizes must fit in 128 lanes"
    w1_row = _round_up(input_size, 8)            # W1' block start
    b0_row = w1_row + _round_up(h0, 8)           # each vector row tile-aligned
    b1_row = b0_row + 8
    wo_row = b1_row + 8
    c_row = wo_row + 8
    n_rows = c_row + 8
    return dict(in_f=input_size, h0=h0, h1=h1, w1_row=w1_row, b0_row=b0_row,
                b1_row=b1_row, wo_row=wo_row, c_row=c_row, n_rows=n_rows)


def _make_kernel(lay):
    IN_F, H0, H1 = lay["in_f"], lay["h0"], lay["h1"]
    W1_R, B0_R, B1_R = lay["w1_row"], lay["b0_row"], lay["b1_row"]
    WO_R, C_R = lay["wo_row"], lay["c_row"]

    def kernel(x_ref, p_ref, out_ref):
        x = x_ref[...]                                            # (TB, IN_F)

        # One MXU pass for everything that consumes x: [W0'(BN-folded) | Ws@Wo]
        t = jnp.dot(x, p_ref[0:IN_F, :],
                    preferred_element_type=jnp.float32)           # (TB, 128)

        b0 = p_ref[B0_R:B0_R + 1, 0:H0]                           # (1, H0)
        h0 = jnp.maximum(t[:, 0:H0] + b0, 0.0)                    # (TB, H0)
        xs = t[:, H0:H0 + 1]                                      # (TB, 1)  x@(Ws@Wo)

        # Layer 1 (BN folded into W1'/b1') + ReLU.
        w1 = p_ref[W1_R:W1_R + H0, 0:H1]                          # (H0, H1)
        b1 = p_ref[B1_R:B1_R + 1, 0:H1]                           # (1, H1)
        h1 = jnp.maximum(
            jnp.dot(h0, w1, preferred_element_type=jnp.float32) + b1, 0.0)

        # Output head as VPU multiply + lane reduce (no width-1 MXU matvec).
        wo = p_ref[WO_R:WO_R + 1, 0:H1]                           # (1, H1)
        c = p_ref[C_R:C_R + 1, 0:1]                               # (1, 1)
        out_ref[...] = jnp.sum(h1 * wo, axis=-1, keepdims=True) + xs + c

    return kernel


def fold_and_pack(params, input_size, hidden_sizes):
    """Fold eval-mode BN + skip-through-head, pack into one (R, 128) buffer."""
    (w0, b0, g0, be0, m0, v0,
     w1, b1, g1, be1, m1, v1,
     ws, bs, wo, bo) = params
    h0, h1 = hidden_sizes[0], hidden_sizes[-1]
    lay = _make_layout(input_size, h0, h1)

    s0 = g0 * jax.lax.rsqrt(v0 + BN_EPS)
    w0f = w0 * s0                                   # (in, h0)
    b0f = (b0 - m0) * s0 + be0                      # (1, h0)
    s1 = g1 * jax.lax.rsqrt(v1 + BN_EPS)
    w1f = w1 * s1                                   # (h0, h1)
    b1f = (b1 - m1) * s1 + be1                      # (1, h1)

    wso = ws @ wo                                   # (in, 1)   skip folded thru head
    c = bs @ wo + bo                                # (1, 1)
    wo_row = wo.T                                   # (1, h1)

    p = jnp.zeros((lay["n_rows"], LANES), jnp.float32)
    p = p.at[0:input_size, 0:h0].set(w0f)
    p = p.at[0:input_size, h0:h0 + 1].set(wso)
    p = p.at[lay["w1_row"]:lay["w1_row"] + h0, 0:h1].set(w1f)
    p = p.at[lay["b0_row"], 0:h0].set(b0f[0])
    p = p.at[lay["b1_row"], 0:h1].set(b1f[0])
    p = p.at[lay["wo_row"], 0:h1].set(wo_row[0])
    p = p.at[lay["c_row"], 0].set(c[0, 0])
    return p


@functools.partial(jax.jit, static_argnames=("input_size", "h0", "h1"))
def total_points_forward(x, packed, *, input_size, h0, h1):
    lay = _make_layout(input_size, h0, h1)
    kernel = _make_kernel(lay)

    batch = x.shape[0]
    tb = min(512, _round_up(batch, 8))              # batch tile (sublane multiple)
    b_pad = _round_up(batch, tb)
    if b_pad != batch:
        x = jnp.pad(x, ((0, b_pad - batch), (0, 0)))

    out = pl.pallas_call(
        kernel,
        out_shape=jax.ShapeDtypeStruct((b_pad, 1), jnp.float32),
        grid=(b_pad // tb,),
        in_specs=[
            pl.BlockSpec((tb, input_size), lambda i: (i, 0)),
            pl.BlockSpec(packed.shape, lambda i: (0, 0)),   # weights stay resident
        ],
        out_specs=pl.BlockSpec((tb, 1), lambda i: (i, 0)),
        compiler_params=pltpu.CompilerParams(
            dimension_semantics=("parallel",),              # megacore-shardable
        ),
    )(x, packed)
    return out[:batch]


def init_params(key, input_size, hidden_sizes):
    """Params matching TotalPointsNeuralNet layout.

    Linear: kaiming_normal_(fan_out, relu) -> std = sqrt(2/out), bias = 0.
    Weights are pre-transposed to (in, out). BatchNorm buffers are given
    non-trivial values (as after training) to actually exercise the eval-mode
    BN folding; PyTorch's fresh init would be weight=1, bias=0, mean=0, var=1.
    """
    h0, h1 = hidden_sizes[0], hidden_sizes[-1]
    k0, k1, ks, ko, kbn = jax.random.split(key, 5)

    def linear(k, fan_in, fan_out):
        std = (2.0 / fan_out) ** 0.5
        w = jax.random.normal(k, (fan_in, fan_out), dtype=jnp.float32) * std
        b = jnp.zeros((1, fan_out), dtype=jnp.float32)
        return w, b

    w0, b0 = linear(k0, input_size, h0)
    w1, b1 = linear(k1, h0, h1)
    ws, bs = linear(ks, input_size, h1)
    wo, bo = linear(ko, h1, 1)

    def bn(k, n):
        kg, kb, km, kv = jax.random.split(k, 4)
        g = 1.0 + 0.1 * jax.random.normal(kg, (1, n), jnp.float32)
        be = 0.1 * jax.random.normal(kb, (1, n), jnp.float32)
        m = 0.1 * jax.random.normal(km, (1, n), jnp.float32)
        v = jax.random.uniform(kv, (1, n), jnp.float32, 0.5, 1.5)
        return g, be, m, v

    kbn0, kbn1 = jax.random.split(kbn)
    g0, be0, m0, v0 = bn(kbn0, h0)
    g1, be1, m1, v1 = bn(kbn1, h1)

    return (w0, b0, g0, be0, m0, v0,
            w1, b1, g1, be1, m1, v1,
            ws, bs, wo, bo)


def reference_forward(x, params):
    """Pure-JAX reference of the eval-mode, batch>1 PyTorch forward (unfolded)."""
    (w0, b0, g0, be0, m0, v0,
     w1, b1, g1, be1, m1, v1,
     ws, bs, wo, bo) = params
    h0 = x @ w0 + b0
    h0 = (h0 - m0) * jax.lax.rsqrt(v0 + BN_EPS) * g0 + be0
    h0 = jnp.maximum(h0, 0.0)
    h1 = h0 @ w1 + b1
    h1 = (h1 - m1) * jax.lax.rsqrt(v1 + BN_EPS) * g1 + be1
    h1 = jnp.maximum(h1, 0.0)
    z = h1 + (x @ ws + bs)
    return z @ wo + bo


if __name__ == "__main__":
    BATCH = 8                 # > 1 so the BatchNorm branch is taken
    INPUT_SIZE = 16
    HIDDEN_SIZES = [64, 32]   # hidden_sizes[1] == hidden_sizes[-1] (see note)

    key = jax.random.PRNGKey(0)
    kx, kp = jax.random.split(key)
    x = jax.random.normal(kx, (BATCH, INPUT_SIZE), dtype=jnp.float32)
    params = init_params(kp, INPUT_SIZE, HIDDEN_SIZES)
    packed = fold_and_pack(params, INPUT_SIZE, HIDDEN_SIZES)

    out = total_points_forward(x, packed, input_size=INPUT_SIZE,
                               h0=HIDDEN_SIZES[0], h1=HIDDEN_SIZES[-1])
    out = jax.block_until_ready(out)

    ref = reference_forward(x, params)
    assert out.shape == (BATCH, 1), out.shape
    assert jnp.allclose(out, ref, atol=1e-4, rtol=1e-4), (out, ref)

    print("KERNEL_OK")
</pallas_src>

<mosaic_0001>
module attributes {stable_mosaic.version = 11 : i64} {
  func.func @kernel(%arg0: i32, %arg1: memref<8x16xf32, #tpu.memory_space<vmem>>, %arg2: memref<112x128xf32, #tpu.memory_space<vmem>>, %arg3: memref<8x1xf32, #tpu.memory_space<vmem>>) attributes {dimension_semantics = [#tpu.dimension_semantics<parallel>], iteration_bounds = array<i64: 1>, scalar_prefetch = 0 : i64, scratch_operands = 0 : i64, tpu.core_type = #tpu.core_type<tc>, window_params = [{transform_indices = @transform_0, window_bounds = array<i64: 8, 16>}, {pipeline_mode = #tpu.pipeline_mode<synchronous>, transform_indices = @transform_1, window_bounds = array<i64: 112, 128>}, {transform_indices = @transform_2, window_bounds = array<i64: 8, 1>}]} {
    %c0 = arith.constant 0 : index
    %c0_0 = arith.constant 0 : index
    %0 = vector.load %arg1[%c0, %c0_0] : memref<8x16xf32, #tpu.memory_space<vmem>>, vector<8x16xf32>
    %c0_1 = arith.constant 0 : index
    %c0_2 = arith.constant 0 : index
    %1 = vector.load %arg2[%c0_1, %c0_2] : memref<112x128xf32, #tpu.memory_space<vmem>>, vector<16x128xf32>
    %cst = arith.constant dense<0.000000e+00> : vector<8x128xf32>
    %2 = tpu.matmul %0, %1, %cst {dimension_numbers = #tpu.dot_dimension_numbers<[1], [0], [0], [1], [0, 0, 1, 1], [], []>} : vector<8x16xf32>, vector<16x128xf32>, vector<8x128xf32> -> vector<8x128xf32>
    %c80 = arith.constant 80 : index
    %c0_3 = arith.constant 0 : index
    %3 = vector.load %arg2[%c80, %c0_3] : memref<112x128xf32, #tpu.memory_space<vmem>>, vector<1x64xf32>
    %4 = vector.extract_strided_slice %2 {offsets = [0, 0], sizes = [8, 64], strides = [1, 1]} : vector<8x128xf32> to vector<8x64xf32>
    %5 = vector.broadcast %3 : vector<1x64xf32> to vector<8x64xf32>
    %6 = arith.addf %4, %5 : vector<8x64xf32>
    %cst_4 = arith.constant 0.000000e+00 : f32
    %7 = vector.broadcast %cst_4 : f32 to vector<8x64xf32>
    %8 = arith.maximumf %6, %7 : vector<8x64xf32>
    %9 = vector.extract_strided_slice %2 {offsets = [0, 64], sizes = [8, 1], strides = [1, 1]} : vector<8x128xf32> to vector<8x1xf32>
    %c16 = arith.constant 16 : index
    %c0_5 = arith.constant 0 : index
    %10 = vector.load %arg2[%c16, %c0_5] : memref<112x128xf32, #tpu.memory_space<vmem>>, vector<64x32xf32>
    %c88 = arith.constant 88 : index
    %c0_6 = arith.constant 0 : index
    %11 = vector.load %arg2[%c88, %c0_6] : memref<112x128xf32, #tpu.memory_space<vmem>>, vector<1x32xf32>
    %cst_7 = arith.constant dense<0.000000e+00> : vector<8x32xf32>
    %12 = tpu.matmul %8, %10, %cst_7 {dimension_numbers = #tpu.dot_dimension_numbers<[1], [0], [0], [1], [0, 0, 1, 1], [], []>} : vector<8x64xf32>, vector<64x32xf32>, vector<8x32xf32> -> vector<8x32xf32>
    %13 = vector.broadcast %11 : vector<1x32xf32> to vector<8x32xf32>
    %14 = arith.addf %12, %13 : vector<8x32xf32>
    %cst_8 = arith.constant 0.000000e+00 : f32
    %15 = vector.broadcast %cst_8 : f32 to vector<8x32xf32>
    %16 = arith.maximumf %14, %15 : vector<8x32xf32>
    %c96 = arith.constant 96 : index
    %c0_9 = arith.constant 0 : index
    %17 = vector.load %arg2[%c96, %c0_9] : memref<112x128xf32, #tpu.memory_space<vmem>>, vector<1x32xf32>
    %c104 = arith.constant 104 : index
    %c0_10 = arith.constant 0 : index
    %18 = vector.load %arg2[%c104, %c0_10] : memref<112x128xf32, #tpu.memory_space<vmem>>, vector<1x1xf32>
    %19 = vector.broadcast %17 : vector<1x32xf32> to vector<8x32xf32>
    %20 = arith.mulf %16, %19 : vector<8x32xf32>
    %cst_11 = arith.constant dense<0.000000e+00> : vector<8xf32>
    %21 = vector.multi_reduction <add>, %20, %cst_11 [1] : vector<8x32xf32> to vector<8xf32>
    %22 = vector.shape_cast %21 : vector<8xf32> to vector<8x1xf32>
    %23 = arith.addf %22, %9 : vector<8x1xf32>
    %24 = vector.broadcast %18 : vector<1x1xf32> to vector<8x1xf32>
    %25 = arith.addf %23, %24 : vector<8x1xf32>
    %c0_12 = arith.constant 0 : index
    %c0_13 = arith.constant 0 : index
    %26 = vector.load %arg3[%c0_12, %c0_13] : memref<8x1xf32, #tpu.memory_space<vmem>>, vector<8x1xf32>
    tpu.vector_store %arg3[%c0_12, %c0_13], %25 {strides = array<i32>} : memref<8x1xf32, #tpu.memory_space<vmem>>, vector<8x1xf32>,
    return
  }
  func.func @transform_0(%arg0: i32) -> (i32, i32) {
    %c0_i32 = arith.constant 0 : i32
    %c0_i32_0 = arith.constant 0 : i32
    return %arg0, %c0_i32 : i32, i32
  }
  func.func @transform_1(%arg0: i32) -> (i32, i32) {
    %c0_i32 = arith.constant 0 : i32
    %c0_i32_0 = arith.constant 0 : i32
    %c0_i32_1 = arith.constant 0 : i32
    return %c0_i32, %c0_i32_0 : i32, i32
  }
  func.func @transform_2(%arg0: i32) -> (i32, i32) {
    %c0_i32 = arith.constant 0 : i32
    %c0_i32_0 = arith.constant 0 : i32
    return %arg0, %c0_i32 : i32, i32
  }
}

</mosaic_0001>

<bundles_post_ra>
// kernel: total_points_forward.1
= control target key start
LH: loop header
LB: loop body
LE: loop exit
PB: predicated region body
PF: predicated region fallthrough
CT: control target
= control target key end

     0   :  { %7 = vsyncpa [#allocation3], 0  ;;  %s414_s0 = inlined_call_operand.hbm [shape: f32[8,16], index: 0, kind: input, shape index: {}]   ;;  %s415_s1 = inlined_call_operand.hbm [shape: f32[112,128], index: 1, kind: input, shape index: {}]   ;;  %s416_s2 = inlined_call_operand.vmem [shape: f32[8,1], index: 2, kind: output, shape index: {}]  }
   0x1   :  { %8 = vsyncpa [#allocation5], 0  ;;  %s357_s9 = smov [#allocation2]   ;;  %s358_s11 = smov [#allocation4]  }
   0x2   :  { %s15_s10 = sshll.u32 %s357_s9, 4  ;;  %s24_s12 = sshll.u32 %s358_s11, 4  ;;  %s16_s10 = int_to_ptr.vmem [resolvable:$true] %s15_s10  ;;  %s380_s12 = int_to_ptr.vmem [resolvable:$true] %s24_s12 }
   0x3   :  { %s309_s15 = scalar_lea.hbm %s414_s0, 128 }
   0x4   :  { %p310_p0 = scmp.ne.s32.totalorder %s414_s0, %s309_s15  ;;  %p313_p1 = scmp.lt.u32.totalorder %s309_s15, %s414_s0 }
   0x6   :  { %p315_p2 = pnand %p313_p1, %p310_p0 }
   0x8   :  { %318 = shalt.err (!%p315_p2)
}
   0x9   :  { %s319_s20 = scalar_lea.vmem %s16_s10, 128  ;;  %p324_p4 = scmp.lt.s32.totalorder %s16_s10, %s16_s10 }
   0xa   :  { %p320_p3 = scmp.ne.s32.totalorder %s16_s10, %s319_s20  ;;  %p325_p5 = scmp.lt.s32.totalorder %s319_s20, %s319_s20 }
   0xc   :  { %p326_p6 = por %p325_p5, %p324_p4 }
   0xe   :  { %p327_p7 = pnand %p326_p6, %p320_p3 }
  0x10   :  { %330 = shalt.err (!%p327_p7)
}
  0x11   :  { %18 = dma.hbm_to_vmem [thread:$0]  %s414_s0, 128, %s16_s10, [#allocation3]  }
  0x12   :  { %s331_s25 = scalar_lea.hbm %s415_s1, 1792 }
  0x13   :  { %p332_p8 = scmp.ne.s32.totalorder %s415_s1, %s331_s25  ;;  %p335_p9 = scmp.lt.u32.totalorder %s331_s25, %s415_s1 }
  0x15   :  { %p337_p10 = pnand %p335_p9, %p332_p8 }
  0x17   :  { %340 = shalt.err (!%p337_p10)
}
  0x18   :  { %s341_s30 = scalar_lea.vmem %s380_s12, 1792  ;;  %p346_p12 = scmp.lt.s32.totalorder %s380_s12, %s380_s12 }
  0x19   :  { %p342_p11 = scmp.ne.s32.totalorder %s380_s12, %s341_s30  ;;  %p347_p13 = scmp.lt.s32.totalorder %s341_s30, %s341_s30 }
  0x1b   :  { %p348_p0 = por %p347_p13, %p346_p12 }
  0x1d   :  { %p349_p1 = pnand %p348_p0, %p342_p11 }
  0x1f   :  { %352 = shalt.err (!%p349_p1)
}
  0x20   :  { %s359_s0 = smov 128   ;;  %s360_s3 = smov 8  }
  0x21   :  { %30 = dma.hbm_to_vmem [thread:$0]  %s415_s1, 1792, %s380_s12, [#allocation5], %s359_s0, %s359_s0, %s360_s3  }
  0x22   :  { %353 = dma.done.wait [#allocation3], 128  }
  0x23   :  { %354 = vsyncadd [#allocation3], 4294967168 }
  0x24   :  { %355 = dma.done.wait [#allocation5], 1792  }
  0x25   :  { %356 = vsyncadd [#allocation5], 4294965504  ;;  %v361_v0 = vmov 0.0|0.0   ;;  %vm362_vm0 = vmmov 0   ;;  %v363_v1 = vmov 0.0   ;;  %v38_v2 = vld [vmem:[#allocation4] sm:$0xff] }
  0x26   :  { %286 = vmatprep.subr.bf16.mxu0 %v361_v0  ;;  %264 = vmatprep.mubr.msk.f32.mxu0 %vm362_vm0, %v363_v1  ;;  %v39_v3 = vld [vmem:[#allocation4 + $0x8] sm:$0xff]  ;;  %v121_v5 = vld [vmem:[#allocation4 + $0x10] sm:$0xff]  ;;  %v122_v6 = vld [vmem:[#allocation4 + $0x18] sm:$0xff]  ;;  %vm40_vm1 = vcmask 130048   ;;  %vm134_vm2 = vcmask 523264   ;;  %vm216_vm3 = vcmask 261120  }
  0x27   :  { %289 = vmatprep.subr.bf16.mxu1 %v361_v0  ;;  %283 = vmatprep.mubr.msk.f32.mxu1 %vm362_vm0, %v363_v1  ;;  %v287_v4 = vpack.c.bf16 %v39_v3, %v38_v2  ;;  %v123_v7 = vld [vmem:[#allocation4 + $0x20] sm:$0xff]  ;;  %v290_v8 = vpack.c.bf16 %v122_v6, %v121_v5  ;;  %v124_v9 = vld [vmem:[#allocation4 + $0x28] sm:$0xff]  ;;  %v37_v10 = vld [vmem:[#allocation2] sm:$0xff]  ;;  %s364_s1 = smov 64   ;;  %vm234_vm4 = vcmask 7168  }
  0x28   :  { %v293_v11 = vpack.c.bf16 %v124_v9, %v123_v7  ;;  %v125_v12 = vld [vmem:[#allocation4 + $0x30] sm:$0xff]  ;;  %v126_v13 = vld [vmem:[#allocation4 + $0x38] sm:$0xff]  ;;  %v127_v15 = vld [vmem:[#allocation4 + $0x40] sm:$0xff] }
  0x29   :  { %288 = vmatpush3.bf16.msra.mxu0 %v287_v4  ;;  %291 = vmatpush3.bf16.msra.mxu1 %v290_v8  ;;  %v296_v14 = vpack.c.bf16 %v126_v13, %v125_v12  ;;  %v128_v16 = vld [vmem:[#allocation4 + $0x48] sm:$0xff]  ;;  %v243_v18 = vld [vmem:[#allocation4 + $0x50] ss:$0 sm:$0xff]  ;;  %v244_v23 = vld [vmem:[#allocation4 + $0x58] ss:$0 sm:$0xff] }
  0x2a   :  { %292 = vmatprep.subr.bf16.mxu1 %v361_v0  ;;  %v299_v17 = vpack.c.bf16 %v128_v16, %v127_v15  ;;  %v246_v27 = vld [vmem:[#allocation4 + $0x60] ss:$0 sm:$0xff]  ;;  %v247_v31 = vld [vmem:[#allocation4 + $0x68] ss:$0 sm:$0xff] }
  0x2c   :  { %265 = vmatmul.mubr.msk.f32.vlgmr.msra.gmra.mrb[0].mxu0 %vm40_vm1, %v37_v10 }
  0x2d   :  { %294 = vmatpush3.bf16.msra.mxu1 %v293_v11 }
  0x2e   :  { %295 = vmatprep.subr.bf16.mxu1 %v361_v0 }
  0x31   :  { %297 = vmatpush3.bf16.msra.mxu1 %v296_v14 }
  0x32   :  { %298 = vmatprep.subr.bf16.mxu1 %v361_v0 }
  0x35   :  { %300 = vmatpush3.bf16.msra.mxu1 %v299_v17 }
  0xff   :  { %v110_v19 = vpop.f32.mrb[0].mxu0 }
 0x100   :  { %v119_v20 = vadd.f32 %v243_v18, %v110_v19  ;;  %v266_v21 = vpop.f32.mrb[1].mxu0 }
 0x102   :  { %v120_v22 = vmax.f32 %v119_v20, 0.0 }
 0x104   :  { %284 = vmatmul.mubr.msk.f32.vlgmr.msra.gmra.mrb[0].mxu1 %vm134_vm2, %v120_v22 }
 0x1d7   :  { %v204_v24 = vpop.f32.mrb[0].mxu1 }
 0x1d8   :  { %v205_v25 = vadd.f32 %v244_v23, %v204_v24  ;;  %v285_v26 = vpop.f32.mrb[1].mxu1 }
 0x1da   :  { %v208_v28 = vmax.f32 %v205_v25, 0.0 }
 0x1dc   :  { %v215_v29 = vmul.f32 %v246_v27, %v208_v28 }
 0x1de   :  { %v217_v30 = vsel %vm216_vm3, %v215_v29, 0.0 }
 0x1df   :  { %218 = vadd.xlane.f32.xlu0 %v217_v30 }
 0x1f5   :  { %226 = vrot.lane.b32.xlu0 %v247_v31, %s364_s1 }
 0x26c   :  { %v219_v32 = vpop.xlane.xlu0 %218 }
 0x26d   :  { %v220_v33 = vadd.f32 %v219_v32, %v110_v19 }
 0x270   :  { %v227_v34 = vpop.permute.xlu0 %226 }
 0x271   :  { %v229_v35 = vadd.f32 %v227_v34, %v220_v33 }
 0x273   :  { %231 = vrot.lane.b32.xlu1 %v229_v35, %s364_s1 }
 0x2e5   :  { %v232_v36 = vpop.permute.xlu1 %231 }
 0x2e6   :  { %235 = vst.msk [vmem:[%s416_s2] sm:$0xff] %vm234_vm4, %v232_v36 }
 0x2e7   :  { %240 = vsyncpa [#allocation3], 1 }
 0x2e8   :  { %241 = vsyncpa [#allocation5], 1 }

</bundles_post_ra>
